<compile_context>
chip_gen: v7x
topology: tpu7x:2x2x1
jax: 0.10.0
libtpu: 0.0.40
codegen_flags: <defaults>
</compile_context>

<pallas_src>
import jax
import jax.numpy as jnp
from jax.experimental import pallas as pl
from jax.experimental.pallas import tpu as pltpu

_LANE = 128


# ---------------------------------------------------------------------------
# EnvironmentMap construction  (environment_map * sineweight)
# ---------------------------------------------------------------------------
def make_environment_map(environment_map: jnp.ndarray, sineweight: jnp.ndarray) -> jnp.ndarray:
    """Equivalent of EnvironmentMap.__init__'s `environment_map * sineweight`.

    Per perf review this stays a plain jnp multiply: for a (E, 3) array the
    pallas_call launch would cost more than the op itself, and XLA fuses it.
    """
    return environment_map * sineweight


# ---------------------------------------------------------------------------
# Tile sizing for the interpolation kernel (HBM-bound).
# ---------------------------------------------------------------------------
def _choose_tile_rows(rows: int, *, max_rows: int = 256, min_steps: int = 8) -> int:
    """Pick the row-tile (in 128-lane rows) for the flattened pixel axis.

    Big tiles amortize the ~0.35 us per-grid-step overhead of this HBM-bound
    kernel; keeping >= min_steps grid steps lets the 'parallel' axis shard
    across v7x's two TensorCores.  max_rows=256 -> 32K pixels (~2 MB of HBM
    traffic) per step; sweep per generation if needed.
    """
    if rows <= 8:
        return rows                       # single full-extent block
    tile = (rows // min_steps) // 8 * 8   # multiple of 8 sublanes
    return max(8, min(max_rows, tile))


# ---------------------------------------------------------------------------
# Kernel: barycentric interpolation of gathered per-face vertex colors (+ mask)
#   out[c, r, l] = (idx[r, l] >= 0) * sum_v bary[v, r, l] * colors[v*C + c, r, l]
# ---------------------------------------------------------------------------
def _interp_kernel(idx_ref, bary_ref, colors_ref, out_ref):
    # idx_ref    : (R, 128)      int32, -1 = background
    # bary_ref   : (3, R, 128)   f32
    # colors_ref : (3*C, R, 128) f32  (gathered per-pixel vertex colors, v-major)
    # out_ref    : (C, R, 128)   f32
    n_ch = out_ref.shape[0]
    mask = (idx_ref[...] >= 0).astype(jnp.float32)   # background mask, in-kernel (VPU)
    b0 = bary_ref[0]
    b1 = bary_ref[1]
    b2 = bary_ref[2]
    for c in range(n_ch):                            # C is tiny (RGB) -> fully unrolled
        texel = (b0 * colors_ref[c]
                 + b1 * colors_ref[n_ch + c]
                 + b2 * colors_ref[2 * n_ch + c])
        out_ref[c] = texel * mask


def sample_textures_pallas(pix_to_face, bary_coords, face_vertex_colors):
    """Pallas equivalent of meshes.sample_textures(fragments) for vertex textures.

    pix_to_face        : (N, H, W, K) int32, -1 = background
    bary_coords        : (N, H, W, K, 3) float32
    face_vertex_colors : (F, 3, C) float32
    returns            : (N, H, W, K, C) float32
    """
    N, H, W, K = pix_to_face.shape
    C = face_vertex_colors.shape[-1]
    P = N * H * W * K

    rows = int(pl.cdiv(P, _LANE))
    tile_rows = _choose_tile_rows(rows)
    rows_pad = int(pl.cdiv(rows, tile_rows)) * tile_rows
    p_pad = rows_pad * _LANE
    n_steps = rows_pad // tile_rows

    # --- XLA glue, kept lane/sublane-dense so no extra transpose pass over the
    # large gathered-color array is needed. --------------------------------
    idx_flat = pix_to_face.reshape(P).astype(jnp.int32)
    idx_flat = jnp.pad(idx_flat, (0, p_pad - P), constant_values=-1)
    idx2d = idx_flat.reshape(rows_pad, _LANE)                       # (rows, 128)

    bary_flat = bary_coords.reshape(P, 3).astype(jnp.float32)
    bary_flat = jnp.pad(bary_flat, ((0, p_pad - P), (0, 0)))
    bary_t = bary_flat.T.reshape(3, rows_pad, _LANE)                # (3, rows, 128)

    # TODO(synk): data-dependent face gather kept in XLA glue (irregular gather,
    # not expressible as a rectangular BlockSpec); the tiny (F,3,C) table is
    # pre-transposed once so the gather emits the kernel layout directly.
    table_t = jnp.transpose(face_vertex_colors.astype(jnp.float32),
                            (1, 2, 0)).reshape(3 * C, -1)           # (3C, F)
    colors_g = table_t[:, jnp.maximum(idx2d, 0)]                    # (3C, rows, 128)

    out = pl.pallas_call(
        _interp_kernel,
        out_shape=jax.ShapeDtypeStruct((C, rows_pad, _LANE), jnp.float32),
        grid=(n_steps,),
        in_specs=[
            pl.BlockSpec((tile_rows, _LANE), lambda i: (i, 0)),
            pl.BlockSpec((3, tile_rows, _LANE), lambda i: (0, i, 0)),
            pl.BlockSpec((3 * C, tile_rows, _LANE), lambda i: (0, i, 0)),
        ],
        out_specs=pl.BlockSpec((C, tile_rows, _LANE), lambda i: (0, i, 0)),
        compiler_params=pltpu.CompilerParams(dimension_semantics=("parallel",)),
    )(idx2d, bary_t, colors_g)

    # TODO(synk): channel-major -> channel-last transpose left to XLA; it is only
    # needed to return pytorch3d's (N, H, W, K, C) layout to the caller.
    out_flat = out.reshape(C, p_pad)[:, :P]                         # (C, P)
    return out_flat.T.reshape(N, H, W, K, C)


# ---------------------------------------------------------------------------
# Module wrapper mirroring AlbedoEnvmap.forward
# ---------------------------------------------------------------------------
def albedo_envmap_forward(pix_to_face, bary_coords, face_vertex_colors, envmap_weighted):
    """AlbedoEnvmap.forward: colors = sample_textures(fragments).squeeze(3).

    `envmap_weighted` is carried (as in the module) but not used by the forward,
    exactly matching the reference semantics.
    """
    del envmap_weighted  # forward returns texels only (albedo pass)
    texels = sample_textures_pallas(pix_to_face, bary_coords, face_vertex_colors)
    # torch .squeeze(3): drop K dim only if it is size 1
    if texels.shape[3] == 1:
        texels = jnp.squeeze(texels, axis=3)
    return texels


if __name__ == "__main__":
    key = jax.random.PRNGKey(0)
    k1, k2, k3, k4, k5 = jax.random.split(key, 5)

    # Small shapes consistent with the module's rasterizer outputs.
    N, H, W, K = 2, 64, 64, 1      # batch, image H/W, faces_per_pixel
    F_faces, C = 64, 3             # number of mesh faces, RGB channels
    E = 128                        # number of environment-map directions

    # Fragments: barycentric coords (normalized) and pix_to_face (-1 = background).
    bary_raw = jax.random.uniform(k1, (N, H, W, K, 3), jnp.float32, 1e-3, 1.0)
    bary_coords = bary_raw / jnp.sum(bary_raw, axis=-1, keepdims=True)
    pix_to_face = jax.random.randint(k2, (N, H, W, K), -1, F_faces, jnp.int32)

    # Deterministic "texture" parameters: per-face per-vertex colors.
    face_vertex_colors = jax.random.uniform(k3, (F_faces, 3, C), jnp.float32)

    # EnvironmentMap inputs (constructor multiplies envmap by sineweight).
    environment_map = jax.random.uniform(k4, (E, 3), jnp.float32)
    sineweight = jax.random.uniform(k5, (E, 3), jnp.float32)
    envmap_weighted = make_environment_map(environment_map, sineweight)

    colors = albedo_envmap_forward(pix_to_face, bary_coords, face_vertex_colors,
                                   envmap_weighted)
    colors = jax.block_until_ready(colors)
    envmap_weighted = jax.block_until_ready(envmap_weighted)

    # Reference check (pure JAX) for correctness.
    px_colors_ref = face_vertex_colors[jnp.maximum(pix_to_face, 0)]          # (N,H,W,K,3,C)
    texels_ref = jnp.einsum("nhwkv,nhwkvc->nhwkc", bary_coords, px_colors_ref)
    texels_ref = texels_ref * (pix_to_face >= 0).astype(jnp.float32)[..., None]
    texels_ref = jnp.squeeze(texels_ref, axis=3)
    assert colors.shape == (N, H, W, C)
    assert jnp.allclose(colors, texels_ref, atol=1e-5, rtol=1e-5)
    assert jnp.allclose(envmap_weighted, environment_map * sineweight, atol=1e-6)

    print("KERNEL_OK")
</pallas_src>

<mosaic_0001>
module attributes {stable_mosaic.version = 11 : i64} {
  func.func @_interp_kernel(%arg0: i32, %arg1: memref<8x128xi32, #tpu.memory_space<vmem>>, %arg2: memref<3x8x128xf32, #tpu.memory_space<vmem>>, %arg3: memref<9x8x128xf32, #tpu.memory_space<vmem>>, %arg4: memref<3x8x128xf32, #tpu.memory_space<vmem>>) attributes {dimension_semantics = [#tpu.dimension_semantics<parallel>], iteration_bounds = array<i64: 8>, scalar_prefetch = 0 : i64, scratch_operands = 0 : i64, tpu.core_type = #tpu.core_type<tc>, window_params = [{transform_indices = @transform_0, window_bounds = array<i64: 8, 128>}, {transform_indices = @transform_1, window_bounds = array<i64: 3, 8, 128>}, {transform_indices = @transform_2, window_bounds = array<i64: 9, 8, 128>}, {transform_indices = @transform_3, window_bounds = array<i64: 3, 8, 128>}]} {
    %c0 = arith.constant 0 : index
    %c0_0 = arith.constant 0 : index
    %0 = vector.load %arg1[%c0, %c0_0] : memref<8x128xi32, #tpu.memory_space<vmem>>, vector<8x128xi32>
    %c0_i32 = arith.constant 0 : i32
    %1 = vector.broadcast %c0_i32 : i32 to vector<8x128xi32>
    %2 = arith.cmpi sge, %0, %1 : vector<8x128xi32>
    %3 = arith.extui %2 : vector<8x128xi1> to vector<8x128xi32>
    %4 = arith.sitofp %3 : vector<8x128xi32> to vector<8x128xf32>
    %c0_1 = arith.constant 0 : index
    %c0_2 = arith.constant 0 : index
    %c0_3 = arith.constant 0 : index
    %5 = vector.load %arg2[%c0_1, %c0_2, %c0_3] : memref<3x8x128xf32, #tpu.memory_space<vmem>>, vector<1x8x128xf32>
    %6 = vector.shape_cast %5 : vector<1x8x128xf32> to vector<8x128xf32>
    %c1 = arith.constant 1 : index
    %c0_4 = arith.constant 0 : index
    %c0_5 = arith.constant 0 : index
    %7 = vector.load %arg2[%c1, %c0_4, %c0_5] : memref<3x8x128xf32, #tpu.memory_space<vmem>>, vector<1x8x128xf32>
    %8 = vector.shape_cast %7 : vector<1x8x128xf32> to vector<8x128xf32>
    %c2 = arith.constant 2 : index
    %c0_6 = arith.constant 0 : index
    %c0_7 = arith.constant 0 : index
    %9 = vector.load %arg2[%c2, %c0_6, %c0_7] : memref<3x8x128xf32, #tpu.memory_space<vmem>>, vector<1x8x128xf32>
    %10 = vector.shape_cast %9 : vector<1x8x128xf32> to vector<8x128xf32>
    %c0_8 = arith.constant 0 : index
    %c0_9 = arith.constant 0 : index
    %c0_10 = arith.constant 0 : index
    %11 = vector.load %arg3[%c0_8, %c0_9, %c0_10] : memref<9x8x128xf32, #tpu.memory_space<vmem>>, vector<1x8x128xf32>
    %12 = vector.shape_cast %11 : vector<1x8x128xf32> to vector<8x128xf32>
    %13 = arith.mulf %6, %12 : vector<8x128xf32>
    %c3 = arith.constant 3 : index
    %c0_11 = arith.constant 0 : index
    %c0_12 = arith.constant 0 : index
    %14 = vector.load %arg3[%c3, %c0_11, %c0_12] : memref<9x8x128xf32, #tpu.memory_space<vmem>>, vector<1x8x128xf32>
    %15 = vector.shape_cast %14 : vector<1x8x128xf32> to vector<8x128xf32>
    %16 = arith.mulf %8, %15 : vector<8x128xf32>
    %17 = arith.addf %13, %16 : vector<8x128xf32>
    %c6 = arith.constant 6 : index
    %c0_13 = arith.constant 0 : index
    %c0_14 = arith.constant 0 : index
    %18 = vector.load %arg3[%c6, %c0_13, %c0_14] : memref<9x8x128xf32, #tpu.memory_space<vmem>>, vector<1x8x128xf32>
    %19 = vector.shape_cast %18 : vector<1x8x128xf32> to vector<8x128xf32>
    %20 = arith.mulf %10, %19 : vector<8x128xf32>
    %21 = arith.addf %17, %20 : vector<8x128xf32>
    %22 = arith.mulf %21, %4 : vector<8x128xf32>
    %c0_15 = arith.constant 0 : index
    %c0_16 = arith.constant 0 : index
    %c0_17 = arith.constant 0 : index
    %23 = vector.load %arg4[%c0_15, %c0_16, %c0_17] : memref<3x8x128xf32, #tpu.memory_space<vmem>>, vector<1x8x128xf32>
    %24 = vector.shape_cast %23 : vector<1x8x128xf32> to vector<8x128xf32>
    %25 = vector.shape_cast %22 : vector<8x128xf32> to vector<1x8x128xf32>
    tpu.vector_store %arg4[%c0_15, %c0_16, %c0_17], %25 {strides = array<i32>} : memref<3x8x128xf32, #tpu.memory_space<vmem>>, vector<1x8x128xf32>,
    %c1_18 = arith.constant 1 : index
    %c0_19 = arith.constant 0 : index
    %c0_20 = arith.constant 0 : index
    %26 = vector.load %arg3[%c1_18, %c0_19, %c0_20] : memref<9x8x128xf32, #tpu.memory_space<vmem>>, vector<1x8x128xf32>
    %27 = vector.shape_cast %26 : vector<1x8x128xf32> to vector<8x128xf32>
    %28 = arith.mulf %6, %27 : vector<8x128xf32>
    %c4 = arith.constant 4 : index
    %c0_21 = arith.constant 0 : index
    %c0_22 = arith.constant 0 : index
    %29 = vector.load %arg3[%c4, %c0_21, %c0_22] : memref<9x8x128xf32, #tpu.memory_space<vmem>>, vector<1x8x128xf32>
    %30 = vector.shape_cast %29 : vector<1x8x128xf32> to vector<8x128xf32>
    %31 = arith.mulf %8, %30 : vector<8x128xf32>
    %32 = arith.addf %28, %31 : vector<8x128xf32>
    %c7 = arith.constant 7 : index
    %c0_23 = arith.constant 0 : index
    %c0_24 = arith.constant 0 : index
    %33 = vector.load %arg3[%c7, %c0_23, %c0_24] : memref<9x8x128xf32, #tpu.memory_space<vmem>>, vector<1x8x128xf32>
    %34 = vector.shape_cast %33 : vector<1x8x128xf32> to vector<8x128xf32>
    %35 = arith.mulf %10, %34 : vector<8x128xf32>
    %36 = arith.addf %32, %35 : vector<8x128xf32>
    %37 = arith.mulf %36, %4 : vector<8x128xf32>
    %c1_25 = arith.constant 1 : index
    %c0_26 = arith.constant 0 : index
    %c0_27 = arith.constant 0 : index
    %38 = vector.load %arg4[%c1_25, %c0_26, %c0_27] : memref<3x8x128xf32, #tpu.memory_space<vmem>>, vector<1x8x128xf32>
    %39 = vector.shape_cast %38 : vector<1x8x128xf32> to vector<8x128xf32>
    %40 = vector.shape_cast %37 : vector<8x128xf32> to vector<1x8x128xf32>
    tpu.vector_store %arg4[%c1_25, %c0_26, %c0_27], %40 {strides = array<i32>} : memref<3x8x128xf32, #tpu.memory_space<vmem>>, vector<1x8x128xf32>,
    %c2_28 = arith.constant 2 : index
    %c0_29 = arith.constant 0 : index
    %c0_30 = arith.constant 0 : index
    %41 = vector.load %arg3[%c2_28, %c0_29, %c0_30] : memref<9x8x128xf32, #tpu.memory_space<vmem>>, vector<1x8x128xf32>
    %42 = vector.shape_cast %41 : vector<1x8x128xf32> to vector<8x128xf32>
    %43 = arith.mulf %6, %42 : vector<8x128xf32>
    %c5 = arith.constant 5 : index
    %c0_31 = arith.constant 0 : index
    %c0_32 = arith.constant 0 : index
    %44 = vector.load %arg3[%c5, %c0_31, %c0_32] : memref<9x8x128xf32, #tpu.memory_space<vmem>>, vector<1x8x128xf32>
    %45 = vector.shape_cast %44 : vector<1x8x128xf32> to vector<8x128xf32>
    %46 = arith.mulf %8, %45 : vector<8x128xf32>
    %47 = arith.addf %43, %46 : vector<8x128xf32>
    %c8 = arith.constant 8 : index
    %c0_33 = arith.constant 0 : index
    %c0_34 = arith.constant 0 : index
    %48 = vector.load %arg3[%c8, %c0_33, %c0_34] : memref<9x8x128xf32, #tpu.memory_space<vmem>>, vector<1x8x128xf32>
    %49 = vector.shape_cast %48 : vector<1x8x128xf32> to vector<8x128xf32>
    %50 = arith.mulf %10, %49 : vector<8x128xf32>
    %51 = arith.addf %47, %50 : vector<8x128xf32>
    %52 = arith.mulf %51, %4 : vector<8x128xf32>
    %c2_35 = arith.constant 2 : index
    %c0_36 = arith.constant 0 : index
    %c0_37 = arith.constant 0 : index
    %53 = vector.load %arg4[%c2_35, %c0_36, %c0_37] : memref<3x8x128xf32, #tpu.memory_space<vmem>>, vector<1x8x128xf32>
    %54 = vector.shape_cast %53 : vector<1x8x128xf32> to vector<8x128xf32>
    %55 = vector.shape_cast %52 : vector<8x128xf32> to vector<1x8x128xf32>
    tpu.vector_store %arg4[%c2_35, %c0_36, %c0_37], %55 {strides = array<i32>} : memref<3x8x128xf32, #tpu.memory_space<vmem>>, vector<1x8x128xf32>,
    return
  }
  func.func @transform_0(%arg0: i32) -> (i32, i32) {
    %c0_i32 = arith.constant 0 : i32
    %c0_i32_0 = arith.constant 0 : i32
    return %arg0, %c0_i32 : i32, i32
  }
  func.func @transform_1(%arg0: i32) -> (i32, i32, i32) {
    %c0_i32 = arith.constant 0 : i32
    %c0_i32_0 = arith.constant 0 : i32
    %c0_i32_1 = arith.constant 0 : i32
    return %c0_i32, %arg0, %c0_i32_0 : i32, i32, i32
  }
  func.func @transform_2(%arg0: i32) -> (i32, i32, i32) {
    %c0_i32 = arith.constant 0 : i32
    %c0_i32_0 = arith.constant 0 : i32
    %c0_i32_1 = arith.constant 0 : i32
    return %c0_i32, %arg0, %c0_i32_0 : i32, i32, i32
  }
  func.func @transform_3(%arg0: i32) -> (i32, i32, i32) {
    %c0_i32 = arith.constant 0 : i32
    %c0_i32_0 = arith.constant 0 : i32
    %c0_i32_1 = arith.constant 0 : i32
    return %c0_i32, %arg0, %c0_i32_0 : i32, i32, i32
  }
}

</mosaic_0001>

<bundles_post_ra>
// kernel: tpu_custom_call.1
= control target key start
LH: loop header
LB: loop body
LE: loop exit
PB: predicated region body
PF: predicated region fallthrough
CT: control target
= control target key end

     0   :  { %s975_s0 = inlined_call_operand.hbm [shape: s32[64,128], index: 0, kind: input, shape index: {}]   ;;  %s976_s1 = inlined_call_operand.hbm [shape: f32[3,64,128], index: 1, kind: input, shape index: {}]   ;;  %s977_s2 = inlined_call_operand.hbm [shape: f32[9,64,128], index: 2, kind: input, shape index: {}]   ;;  %s978_s3 = inlined_call_operand.hbm [shape: f32[3,64,128], index: 3, kind: output, shape index: {}]  }
   0x1   :  { %984 = sst [smem:[#allocation12_spill]] %s976_s1 }
   0x2   :  { %8 = vsyncpa [#allocation3], 0 }
   0x3   :  { %10 = vsyncpa [#allocation3 + $0x1], 0 }
   0x4   :  { %11 = vsyncpa [#allocation6], 0 }
   0x5   :  { %13 = vsyncpa [#allocation6 + $0x1], 0 }
   0x6   :  { %14 = vsyncpa [#allocation4], 0 }
   0x7   :  { %16 = vsyncpa [#allocation4 + $0x1], 0  ;;  %s724_s12 = smov 0   ;;  %s726_s13 = smov 0  }
   0x8   :  { %s728_s14 = smov 0   ;;  %s730_s15 = smov 0  }
   0x9 LB: > { %s745_s16 = sadd.s32 4294967295, %s691_s15   ;;  %s439_s17 = sadd.s32 4294967294, %s691_s15   ;;  %s691_s15 = sphi %s730_s15, %s1002_s15   ;;  %s687_s14 = sphi %s728_s14, %s1001_s14   ;;  %s683_s13 = sphi %s726_s13, %s1000_s13   ;;  %s679_s12 = sphi %s724_s12, %s999_s12  }
   0xa   : > { %s749_s18 = sadd.s32 1, %s691_s15   ;;  %s29_s19 = sadd.s32 1, %s687_s14 }
   0xb   : > { %s26_s20 = ssub.s32 %s691_s15, %s749_s18  ;;  %p36_p0 = scmp.ne.s32.totalorder %s687_s14, %s683_s13 }
   0xc   : > { %p27_p1 = scmp.eq.s32.totalorder %s26_s20, 0  ;;  %p37_p2 = scmp.eq.s32.totalorder %s691_s15, 0 }
   0xd   : > { %p42_p3 = scmp.ne.s32.totalorder %s683_s13, %s679_s12  ;;  %p43_p4 = scmp.eq.s32.totalorder %s745_s16, 0 }
   0xe   : > { %s761_s21 = scalar_select %p27_p1, %s687_s14, %s29_s19  }
   0xf   : > { %p38_p5 = por %p37_p2, %p36_p0  ;;  %p763_p6 = por %p43_p4, %p42_p3 }
  0x10   : > { %p118_p7 = scmp.eq.s32.totalorder %s745_s16, 7  ;;  %p124_p8 = scmp.eq.s32.totalorder %s439_s17, 7 }
  0x11   : > { %s985_s22 = scalar_select %p763_p6, 1, 0 }
  0x12   : > { %p490_p9 = scmp.lt.s32.totalorder %s691_s15, 8  ;;  %p769_p10 = por %p118_p7, %p36_p0 }
  0x13   : > { %p773_p11 = por %p124_p8, %p42_p3  ;;  %s778_s25 = sand.u32 1, %s687_s14  }
  0x14   : > { %s986_s23 = scalar_select %p769_p10, 1, 0 }
  0x15   : > { %s987_s24 = scalar_select %p773_p11, 1, 0 }
  0x16   : > { %s781_s26 = sshll.u32 %s691_s15, 7  ;;  %p783_p12 = pnand %p490_p9, %p38_p5 }
  0x17   : > { %s162_s28 = sand.u32 1, %s691_s15   ;;  %s464_s29 = smul.u32 24, %s778_s25 }
  0x18   : > { %s989_s1 = sld [smem:[#allocation12_spill]]  ;;  %s797_s8 = scalar_lea.sflag [#allocation6], %s162_s28 }
  0x19   : > { %s166_s6 = scalar_lea.vmem [#allocation5], %s464_s29  ;;  %p803_p0 = pneg %p783_p12 }
  0x1a   : > { %s172_s7 = sshll.u32 %s166_s6, 4  ;;  %s795_s7 = int_to_ptr.vmem [resolvable:$true] %s172_s7 }
  0x1e   : > { %s793_s5 = scalar_lea.hbm %s989_s1, %s781_s26  ;;  %s536_s19 = scalar_lea.hbm %s989_s1, 3072 }
  0x1f   : > { %s531_s9 = scalar_lea.hbm %s793_s5, 384  ;;  %p537_p3 = scmp.lt.u32.totalorder %s793_s5, %s989_s1 }
  0x20   : > { %p532_p13 = scmp.ne.s32.totalorder %s793_s5, %s531_s9  ;;  %p538_p4 = scmp.lt.u32.totalorder %s536_s19, %s531_s9 }
  0x21   : > { %p540_p7 = scmp.lt.u32.totalorder %s531_s9, %s793_s5 }
  0x22   : > { %p534_p1 = pnand %p803_p0, %p532_p13  ;;  %p539_p5 = por %p538_p4, %p537_p3 }
  0x24   : > { %p535_p2 = pneg %p534_p1  ;;  %p541_p8 = por %p540_p7, %p539_p5 }
  0x26   : > { %p542_p9 = pnand %p541_p8, %p535_p2 }
  0x28   : > { %545 = shalt.err (!%p542_p9)
}
  0x29   : > { %s546_s28 = scalar_lea.vmem %s795_s7, 384  ;;  %s693_s30 = smov [#allocation5]  }
  0x2a   : > { %p547_p13 = scmp.ne.s32.totalorder %s795_s7, %s546_s28  ;;  %s551_s4 = sshll.u32 %s693_s30, 4  ;;  %s552_s4 = int_to_ptr.vmem [resolvable:$false] %s551_s4 }
  0x2b   : > { %s553_s6 = scalar_lea.vmem %s552_s4, 768  ;;  %p554_p10 = scmp.lt.s32.totalorder %s795_s7, %s552_s4 }
  0x2c   : > { %p549_p1 = pnand %p547_p13, %p803_p0  ;;  %p555_p6 = scmp.lt.s32.totalorder %s553_s6, %s546_s28 }
  0x2e   : > { %p550_p11 = pneg %p549_p1  ;;  %p556_p3 = por %p555_p6, %p554_p10 }
  0x30   : > { %p557_p4 = pnand %p556_p3, %p550_p11 }
  0x32   : > { %560 = shalt.err (!%p557_p4)
}
  0x33   : > { %s981_s9 = smov 1024   ;;  %s982_s11 = smov 128  }
  0x34   : > { %s983_s17 = smov 8   ;;  %p446_p6 = scmp.ge.s32.totalorder %s691_s15, 1 }
  0x35   : > { %482 = dma.hbm_to_vmem [thread:$0]  (!%p783_p12), %s793_s5, 384, %s795_s7, %s797_s8, %s981_s9, %s982_s11, %s983_s17  }
  0x36   : > { %p200_p10 = scmp.lt.s32.totalorder %s691_s15, 9  ;;  %s442_s19 = sshll.u32 %s778_s25, 3 }
  0x37   : > { %s841_s30 = scalar_lea.hbm %s975_s0, %s781_s26  ;;  %s148_s4 = scalar_lea.vmem [#allocation2], %s442_s19 }
  0x38   : > { %p833_p11 = pnand %p446_p6, %p200_p10  ;;  %s155_s6 = sshll.u32 %s148_s4, 4  ;;  %s843_s6 = int_to_ptr.vmem [resolvable:$true] %s155_s6 }
  0x39   : > { %s465_s5 = smul.u32 72, %s778_s25  ;;  %s145_s7 = scalar_lea.sflag [#allocation3], %s778_s25 }
  0x3a   : > { %s991_s20 = scalar_select %p833_p11, 1, 0 }
  0x3b   : > { %s561_s9 = scalar_lea.hbm %s841_s30, 128  ;;  %s566_s29 = scalar_lea.hbm %s975_s0, 1024 }
  0x3c   : > { %p562_p2 = scmp.ne.s32.totalorder %s841_s30, %s561_s9  ;;  %p567_p8 = scmp.lt.u32.totalorder %s841_s30, %s975_s0 }
  0x3d   : > { %p568_p9 = scmp.lt.u32.totalorder %s566_s29, %s561_s9  ;;  %p570_p1 = scmp.lt.u32.totalorder %s561_s9, %s841_s30 }
  0x3e   : > { %p564_p5 = pnand %p562_p2, %p803_p0 }
  0x3f   : > { %p569_p13 = por %p568_p9, %p567_p8 }
  0x40   : > { %p565_p7 = pneg %p564_p5 }
  0x41   : > { %p571_p3 = por %p570_p1, %p569_p13 }
  0x43   : > { %p572_p4 = pnand %p571_p3, %p565_p7 }
  0x45   : > { %575 = shalt.err (!%p572_p4)
}
  0x46   : > { %s576_s19 = scalar_lea.vmem %s843_s6, 128  ;;  %s697_s11 = smov [#allocation2]  }
  0x47   : > { %p577_p6 = scmp.ne.s32.totalorder %s843_s6, %s576_s19  ;;  %s581_s17 = sshll.u32 %s697_s11, 4  ;;  %s582_s17 = int_to_ptr.vmem [resolvable:$false] %s581_s17 }
  0x48   : > { %s583_s1 = scalar_lea.vmem %s582_s17, 256  ;;  %p584_p5 = scmp.lt.s32.totalorder %s843_s6, %s582_s17 }
  0x49   : > { %p579_p10 = pnand %p577_p6, %p803_p0  ;;  %p585_p11 = scmp.lt.s32.totalorder %s583_s1, %s576_s19 }
  0x4b   : > { %p580_p2 = pneg %p579_p10  ;;  %p586_p8 = por %p585_p11, %p584_p5 }
  0x4d   : > { %p587_p9 = pnand %p586_p8, %p580_p2 }
  0x4f   : > { %590 = shalt.err (!%p587_p9)
}
  0x50   : > { %479 = dma.hbm_to_vmem [thread:$0]  (!%p783_p12), %s841_s30, 128, %s843_s6, %s145_s7  }
  0x51   : > { %s872_s29 = scalar_lea.hbm %s977_s2, %s781_s26  ;;  %s186_s28 = scalar_lea.vmem [#allocation7], %s465_s5 }
  0x52   : > { %s192_s19 = sshll.u32 %s186_s28, 4  ;;  %s591_s11 = scalar_lea.hbm %s872_s29, 1152  ;;  %s876_s19 = int_to_ptr.vmem [resolvable:$true] %s192_s19 }
  0x53   : > { %p592_p11 = scmp.ne.s32.totalorder %s872_s29, %s591_s11  ;;  %s596_s7 = scalar_lea.hbm %s977_s2, 9216 }
  0x54   : > { %p597_p1 = scmp.lt.u32.totalorder %s872_s29, %s977_s2  ;;  %p598_p3 = scmp.lt.u32.totalorder %s596_s7, %s591_s11 }
  0x55   : > { %p594_p7 = pnand %p592_p11, %p803_p0  ;;  %p600_p6 = scmp.lt.u32.totalorder %s591_s11, %s872_s29 }
  0x56   : > { %p599_p4 = por %p598_p3, %p597_p1 }
  0x57   : > { %p595_p13 = pneg %p594_p7 }
  0x58   : > { %p601_p10 = por %p600_p6, %p599_p4 }
  0x5a   : > { %p602_p2 = pnand %p601_p10, %p595_p13 }
  0x5c   : > { %605 = shalt.err (!%p602_p2)
}
  0x5d   : > { %s606_s25 = scalar_lea.vmem %s876_s19, 1152  ;;  %s698_s5 = smov [#allocation7]  }
  0x5e   : > { %p607_p5 = scmp.ne.s32.totalorder %s876_s19, %s606_s25  ;;  %s611_s1 = sshll.u32 %s698_s5, 4  ;;  %s612_s1 = int_to_ptr.vmem [resolvable:$false] %s611_s1 }
  0x5f   : > { %s613_s9 = scalar_lea.vmem %s612_s1, 2304  ;;  %p614_p11 = scmp.lt.s32.totalorder %s876_s19, %s612_s1 }
  0x60   : > { %p609_p8 = pnand %p607_p5, %p803_p0  ;;  %p615_p7 = scmp.lt.s32.totalorder %s613_s9, %s606_s25 }
  0x62   : > { %p610_p9 = pneg %p609_p8  ;;  %p616_p1 = por %p615_p7, %p614_p11 }
  0x64   : > { %p617_p3 = pnand %p616_p1, %p610_p9 }
  0x66   : > { %620 = shalt.err (!%p617_p3)
}
  0x67   : > { %s992_s4 = smov 8   ;;  %s993_s28 = smov 128  }
  0x68   : > { %s994_s11 = smov 1024   ;;  %p995_p0 = scmp.ne.s32.totalorder %s991_s20, 0 }
  0x69   : > { %485 = dma.hbm_to_vmem [thread:$0]  (!%p783_p12), %s872_s29, 1152, %s876_s19, %s797_s8, %s994_s11, %s993_s28, %s992_s4  }
  0x6a   : > { %204 = sbr.rel (%p995_p0) target bundleno = 148 (0x94), region = 32  ;;  %s906_s10 = sand.u32 (!%p995_p0), 1, %s683_s13  }
  0x6b   : > { %s447_s30 = sshll.u32 (!%p995_p0), %s906_s10, 3  ;;  %s207_s6 = scalar_lea.sflag (!%p995_p0), [#allocation3], %s906_s10 }
  0x6c   : > { %s210_s7 = scalar_lea.vmem (!%p995_p0), [#allocation2], %s447_s30  ;;  %p996_p13 = scmp.ne.s32.totalorder (!%p995_p0), %s985_s22, 0 }
  0x71   : > { %666 = dma.done.wait (%p996_p13), %s207_s6, 128  }
  0x72   : > { %668 = vsyncadd (%p996_p13), %s207_s6, 4294967168  ;;  %s215_s27 = sand.u32 1, %s745_s16   ;;  %s466_s8 = smul.u32 24, %s906_s10 }
  0x73   : > { %s216_s20 = scalar_lea.sflag [#allocation6], %s215_s27 }
  0x74   : > { %s219_s29 = scalar_lea.vmem [#allocation5], %s466_s8 }
  0x75   : > { %670 = dma.done.wait (%p996_p13), %s216_s20, 1536  }
  0x76   : > { %672 = vsyncadd (%p996_p13), %s216_s20, 4294965760  ;;  %s467_s19 = smul.u32 72, %s906_s10  ;;  %v261_v0 = vld [vmem:[%s210_s7] sm:$0xff]  ;;  %v449_v2 = vld [vmem:[%s219_s29 + $0x8] sm:$0xff]  ;;  %v699_v22 = vmov 0.0   ;;  %s260_s22 = scalar_lea.vmem [#allocation8], %s466_s8 }
  0x77   : > { %v265_v1 = vld [vmem:[%s219_s29] sm:$0xff]  ;;  %v450_v3 = vld [vmem:[%s219_s29 + $0x10] sm:$0xff]  ;;  %vm262_vm0 = vcmp.ge.s32.totalorder %v261_v0, 0  ;;  %s323_s17 = sshll.u32 %s260_s22, 4  ;;  %s461_s25 = sshll.u32 %s745_s16, 7  ;;  %s927_s17 = int_to_ptr.vmem [resolvable:$true] %s323_s17 }
  0x78   : > { %s228_s26 = scalar_lea.vmem [#allocation7], %s467_s19  ;;  %v448_v23 = vsel %vm262_vm0, 1.0, %v699_v22  ;;  %s932_s9 = scalar_lea.hbm %s978_s3, %s461_s25 }
  0x79   : > { %v270_v4 = vld [vmem:[%s228_s26] sm:$0xff]  ;;  %v451_v5 = vld [vmem:[%s228_s26 + $0x18] sm:$0xff]  ;;  %v452_v8 = vld [vmem:[%s228_s26 + $0x30] sm:$0xff]  ;;  %s311_s4 = scalar_lea.sflag [#allocation4], %s906_s10  ;;  %s621_s16 = scalar_lea.vmem %s927_s17, 384 }
  0x7a   : > { %v271_v6 = vmul.f32 %v270_v4, %v265_v1  ;;  %v274_v7 = vmul.f32 %v451_v5, %v449_v2  ;;  %v453_v9 = vld [vmem:[%s228_s26 + $0x8] sm:$0xff]  ;;  %v454_v10 = vld [vmem:[%s228_s26 + $0x20] sm:$0xff]  ;;  %v278_v11 = vmul.f32 %v452_v8, %v450_v3  ;;  %v455_v14 = vld [vmem:[%s228_s26 + $0x38] sm:$0xff]  ;;  %p622_p12 = scmp.ne.s32.totalorder %s927_s17, %s621_s16  ;;  %p997_p4 = scmp.ne.s32.totalorder %s986_s23, 0 }
  0x7b   : > { %v284_v12 = vmul.f32 %v453_v9, %v265_v1  ;;  %v287_v13 = vmul.f32 %v454_v10, %v449_v2  ;;  %v457_v15 = vld [vmem:[%s228_s26 + $0x10] sm:$0xff]  ;;  %v458_v16 = vld [vmem:[%s228_s26 + $0x28] sm:$0xff]  ;;  %v291_v18 = vmul.f32 %v455_v14, %v450_v3  ;;  %v459_v21 = vld [vmem:[%s228_s26 + $0x40] sm:$0xff]  ;;  %s700_s28 = smov [#allocation8]  }
  0x7c   : > { %v275_v17 = vadd.f32 %v274_v7, %v271_v6  ;;  %v298_v19 = vmul.f32 %v457_v15, %v265_v1  ;;  %v301_v20 = vmul.f32 %v458_v16, %v449_v2  ;;  %v305_v25 = vmul.f32 %v459_v21, %v450_v3  ;;  %p623_p6 = pnand %p622_p12, %p997_p4  ;;  %s625_s11 = sshll.u32 %s700_s28, 4  ;;  %s626_s11 = int_to_ptr.vmem [resolvable:$false] %s625_s11 }
  0x7d   : > { %v288_v24 = vadd.f32 %v287_v13, %v284_v12  ;;  %s627_s30 = scalar_lea.vmem %s626_s11, 768  ;;  %p628_p2 = scmp.lt.s32.totalorder %s927_s17, %s626_s11 }
  0x7e   : > { %v279_v26 = vadd.f32 %v278_v11, %v275_v17  ;;  %v302_v27 = vadd.f32 %v301_v20, %v298_v19  ;;  %p624_p10 = pneg %p623_p6  ;;  %p629_p5 = scmp.lt.s32.totalorder %s627_s30, %s621_s16 }
  0x7f   : > { %v292_v28 = vadd.f32 %v291_v18, %v288_v24 }
  0x80   : > { %v280_v29 = vmul.f32 %v448_v23, %v279_v26  ;;  %v306_v30 = vadd.f32 %v305_v25, %v302_v27  ;;  %p630_p8 = por %p629_p5, %p628_p2 }
  0x81   : > { %v293_v31 = vmul.f32 %v448_v23, %v292_v28 }
  0x82   : > { %281 = vst [vmem:[%s260_s22] sm:$0xff] %v280_v29  ;;  %v307_v32 = vmul.f32 %v448_v23, %v306_v30  ;;  %p631_p9 = pnand %p630_p8, %p624_p10 }
  0x83   : > { %456 = vst [vmem:[%s260_s22 + $0x8] sm:$0xff] %v293_v31 }
  0x84   : > { %460 = vst [vmem:[%s260_s22 + $0x10] sm:$0xff] %v307_v32 }
  0x85   : > { %634 = shalt.err (!%p631_p9)
}
  0x86   : > { %s635_s6 = scalar_lea.hbm %s932_s9, 384  ;;  %s639_s8 = scalar_lea.hbm %s978_s3, 3072 }
  0x87   : > { %p636_p11 = scmp.ne.s32.totalorder %s932_s9, %s635_s6  ;;  %p640_p3 = scmp.lt.u32.totalorder %s932_s9, %s978_s3 }
  0x88   : > { %p641_p0 = scmp.lt.u32.totalorder %s639_s8, %s635_s6  ;;  %p643_p12 = scmp.lt.u32.totalorder %s635_s6, %s932_s9 }
  0x89   : > { %p637_p7 = pnand %p636_p11, %p997_p4 }
  0x8a   : > { %p642_p13 = por %p641_p0, %p640_p3 }
  0x8b   : > { %p638_p1 = pneg %p637_p7 }
  0x8c   : > { %p644_p6 = por %p643_p12, %p642_p13 }
  0x8e   : > { %p645_p10 = pnand %p644_p6, %p638_p1 }
  0x90   : > { %648 = shalt.err (!%p645_p10)
}
  0x91   : > { %s701_s19 = smov 128   ;;  %s702_s26 = smov 1024  }
  0x92   : > { %s703_s22 = smov 8  }
  0x93   : > { %474 = dma.vmem_to_hbm [thread:$0]  (%p997_p4), %s927_s17, 384, %s932_s9, %s311_s4, %s701_s19, %s702_s26, %s703_s22  }
  0x94 PF: > { %p491_p2 = scmp.ge.s32.totalorder %s691_s15, 2  ;;  %s338_s25 = sand.u32 1, %s679_s12  }
  0x95   : > { %p998_p5 = scmp.ne.s32.totalorder %s987_s24, 0  ;;  %s339_s5 = scalar_lea.sflag [#allocation4], %s338_s25 }
  0x97   : > { %p487_p8 = pnand %p491_p2, %p998_p5 }
  0x99   : > { %674 = dma.done.wait (!%p487_p8), %s339_s5, 384  }
  0x9a   : > { %676 = vsyncadd (!%p487_p8), %s339_s5, 4294966912  ;;  %p19_p9 = scmp.ge.s32.totalorder %s749_s18, 10   ;;  %s999_s12 = smov %s683_s13 }
  0x9b   : > { %s1000_s13 = smov %s687_s14  ;;  %s1001_s14 = smov %s761_s21 }
  0x9c   : > { %s1002_s15 = smov %s749_s18  ;;  %21 = sbr.rel (!%p19_p9) target bundleno = 9 (0x9), region = 113 }
  0xa3   :  { %344 = vsyncpa [#allocation3], 1 }
  0xa4   :  { %346 = vsyncpa [#allocation3 + $0x1], 1 }
  0xa5   :  { %347 = vsyncpa [#allocation6], 1 }
  0xa6   :  { %349 = vsyncpa [#allocation6 + $0x1], 1 }
  0xa7   :  { %350 = vsyncpa [#allocation4], 1 }
  0xa8   :  { %352 = vsyncpa [#allocation4 + $0x1], 1 }

</bundles_post_ra>
